<compile_context>
chip_gen: v7x
topology: tpu7x:2x2x1
jax: 0.10.0
libtpu: 0.0.40
codegen_flags: <defaults>
</compile_context>

<pallas_src>
import functools

import jax
import jax.numpy as jnp
from jax.experimental import pallas as pl
from jax.experimental.pallas import tpu as pltpu

LANES = 128
ACC_SUBLANES = 8
BLOCK_BYTES = 4 * 1024 * 1024     # per-input bytes per grid step (f32 -> 8192 rows)
VMEM_LIMIT_BYTES = 40 << 20       # < v7x's 64 MiB physical; > v5e's 16 MiB default


def _tversky_partials_kernel(x_ref, t_ref, o_ref, acc_xt, acc_x, acc_t, *,
                             m_rows, tile_rows, needs_tail_mask, acc_rows):
    i = pl.program_id(0)
    num_tiles = pl.num_programs(0)

    @pl.when(i == 0)
    def _init():
        acc_xt[...] = jnp.zeros_like(acc_xt)
        acc_x[...] = jnp.zeros_like(acc_x)
        acc_t[...] = jnp.zeros_like(acc_t)

    def accumulate(x, t):
        prod = x * t
        if acc_rows == ACC_SUBLANES:
            # Reshape matches native (8, 128) vreg tiling -> pure full-vreg adds.
            acc_xt[...] += jnp.sum(prod.reshape(-1, ACC_SUBLANES, LANES), axis=0)
            acc_x[...] += jnp.sum(x.reshape(-1, ACC_SUBLANES, LANES), axis=0)
            acc_t[...] += jnp.sum(t.reshape(-1, ACC_SUBLANES, LANES), axis=0)
        else:
            acc_xt[...] += jnp.sum(prod, axis=0, keepdims=True)
            acc_x[...] += jnp.sum(x, axis=0, keepdims=True)
            acc_t[...] += jnp.sum(t, axis=0, keepdims=True)

    if needs_tail_mask:
        is_tail = i == num_tiles - 1

        @pl.when(jnp.logical_not(is_tail))
        def _interior():  # unmasked fast path for fully-valid tiles
            x = jax.nn.sigmoid(x_ref[...].astype(jnp.float32))
            t = t_ref[...].astype(jnp.float32)
            accumulate(x, t)

        @pl.when(is_tail)
        def _tail():
            row_ids = i * tile_rows + jax.lax.broadcasted_iota(
                jnp.int32, x_ref.shape, 0)
            valid = row_ids < m_rows
            # Keep SELECT semantics: rows past the array end hold unspecified
            # data from the boundary DMA (sigmoid may produce NaN there).
            x = jnp.where(valid,
                          jax.nn.sigmoid(x_ref[...].astype(jnp.float32)), 0.0)
            t = jnp.where(valid, t_ref[...].astype(jnp.float32), 0.0)
            accumulate(x, t)
    else:
        x = jax.nn.sigmoid(x_ref[...].astype(jnp.float32))
        t = t_ref[...].astype(jnp.float32)
        accumulate(x, t)

    @pl.when(i == num_tiles - 1)
    def _epilogue():
        # Single cross-lane (and sublane) reduction per quantity, once.
        o_ref[0, 0] = jnp.sum(acc_xt[...])
        o_ref[0, 1] = jnp.sum(acc_x[...])
        o_ref[0, 2] = jnp.sum(acc_t[...])


def _tversky_partial_sums_pallas(x2, t2):
    """Returns (sum(sigmoid(x)*t), sum(sigmoid(x)), sum(t)) over an (m, 128) view."""
    m = x2.shape[0]
    itemsize = max(x2.dtype.itemsize, t2.dtype.itemsize)
    budget_rows = max(
        ACC_SUBLANES,
        (BLOCK_BYTES // (LANES * itemsize)) // ACC_SUBLANES * ACC_SUBLANES)
    tile_rows = m if m <= budget_rows else budget_rows
    num_tiles = pl.cdiv(m, tile_rows)
    needs_tail_mask = (m % tile_rows) != 0
    acc_rows = ACC_SUBLANES if tile_rows % ACC_SUBLANES == 0 else 1

    kernel = functools.partial(
        _tversky_partials_kernel,
        m_rows=m, tile_rows=tile_rows,
        needs_tail_mask=needs_tail_mask, acc_rows=acc_rows)

    n_elems = m * LANES
    cost = pl.CostEstimate(
        flops=5 * n_elems,
        transcendentals=n_elems,
        bytes_accessed=n_elems * (x2.dtype.itemsize + t2.dtype.itemsize) + 12)

    partials = pl.pallas_call(
        kernel,
        out_shape=jax.ShapeDtypeStruct((1, 3), jnp.float32),
        grid_spec=pltpu.PrefetchScalarGridSpec(
            num_scalar_prefetch=0,
            grid=(num_tiles,),
            in_specs=[
                pl.BlockSpec((tile_rows, LANES), lambda i: (i, 0)),
                pl.BlockSpec((tile_rows, LANES), lambda i: (i, 0)),
            ],
            out_specs=pl.BlockSpec((1, 3), lambda i: (0, 0),
                                   memory_space=pltpu.SMEM),
            scratch_shapes=[
                pltpu.VMEM((acc_rows, LANES), jnp.float32),  # sum(x * t)
                pltpu.VMEM((acc_rows, LANES), jnp.float32),  # sum(x)
                pltpu.VMEM((acc_rows, LANES), jnp.float32),  # sum(t)
            ],
        ),
        compiler_params=pltpu.CompilerParams(
            dimension_semantics=("arbitrary",),
            vmem_limit_bytes=VMEM_LIMIT_BYTES,
        ),
        cost_estimate=cost,
    )(x2, t2)
    return partials[0, 0], partials[0, 1], partials[0, 2]


def tversky_loss(inputs, targets, alpha=0.5, beta=0.5, smooth=1.0):
    """Pallas TPU implementation of TverskyLoss.forward (returns a scalar)."""
    x = inputs.reshape(-1)
    t = targets.reshape(-1)
    n = x.shape[0]
    n_main = (n // LANES) * LANES

    s_xt = jnp.float32(0.0)
    s_x = jnp.float32(0.0)
    s_t = jnp.float32(0.0)

    if n_main > 0:
        x2 = x[:n_main].reshape(-1, LANES)
        t2 = t[:n_main].reshape(-1, LANES)
        p_xt, p_x, p_t = _tversky_partial_sums_pallas(x2, t2)
        s_xt = s_xt + p_xt
        s_x = s_x + p_x
        s_t = s_t + p_t

    if n_main < n:
        # <128-element ragged tail: reduce in plain JAX (no full-array copy).
        xt = jax.nn.sigmoid(x[n_main:].astype(jnp.float32))
        tt = t[n_main:].astype(jnp.float32)
        s_xt = s_xt + jnp.sum(xt * tt)
        s_x = s_x + jnp.sum(xt)
        s_t = s_t + jnp.sum(tt)

    tp = s_xt
    fp = s_x - s_xt   # sum((1 - t) * sigmoid(x))
    fn = s_t - s_xt   # sum(t * (1 - sigmoid(x)))
    tversky = (tp + smooth) / (tp + alpha * fp + beta * fn + smooth)
    return 1.0 - tversky


def tversky_loss_ref(inputs, targets, alpha=0.5, beta=0.5, smooth=1.0):
    x = jax.nn.sigmoid(inputs.astype(jnp.float32))
    t = targets.astype(jnp.float32)
    tp = jnp.sum(x * t)
    fp = jnp.sum((1.0 - t) * x)
    fn = jnp.sum(t * (1.0 - x))
    tversky = (tp + smooth) / (tp + alpha * fp + beta * fn + smooth)
    return 1.0 - tversky


if __name__ == "__main__":
    key = jax.random.PRNGKey(0)
    k1, k2 = jax.random.split(key)

    # Segmentation-style loss: NCHW logits + binary targets.
    shape = (2, 4, 16, 16)
    inputs = jax.random.normal(k1, shape, dtype=jnp.float32)
    targets = (jax.random.uniform(k2, shape) > 0.5).astype(jnp.float32)

    loss = tversky_loss(inputs, targets, alpha=0.5, beta=0.5, smooth=1.0)
    loss = jax.block_until_ready(loss)

    ref = tversky_loss_ref(inputs, targets, alpha=0.5, beta=0.5, smooth=1.0)
    assert jnp.allclose(loss, ref, atol=1e-5, rtol=1e-5), (loss, ref)

    print("KERNEL_OK")
</pallas_src>

<mosaic_0001>
module attributes {stable_mosaic.version = 11 : i64} {
  func.func @_tversky_partials_kernel(%arg0: i32, %arg1: memref<16x128xf32, #tpu.memory_space<vmem>>, %arg2: memref<16x128xf32, #tpu.memory_space<vmem>>, %arg3: memref<1x3xf32, #tpu.memory_space<smem>>, %arg4: memref<8x128xf32, #tpu.memory_space<vmem>>, %arg5: memref<8x128xf32, #tpu.memory_space<vmem>>, %arg6: memref<8x128xf32, #tpu.memory_space<vmem>>) attributes {dimension_semantics = [#tpu.dimension_semantics<arbitrary>], iteration_bounds = array<i64: 1>, scalar_prefetch = 0 : i64, scratch_operands = 3 : i64, tpu.core_type = #tpu.core_type<tc>, window_params = [{transform_indices = @transform_0, window_bounds = array<i64: 16, 128>}, {transform_indices = @transform_1, window_bounds = array<i64: 16, 128>}, {transform_indices = @transform_2, window_bounds = array<i64: 1, 3>}]} {
    %c0_i32 = arith.constant 0 : i32
    %0 = arith.cmpi eq, %arg0, %c0_i32 : i32
    %1 = arith.extui %0 : i1 to i32
    %c0_i32_0 = arith.constant 0 : i32
    %2 = arith.cmpi ne, %1, %c0_i32_0 : i32
    scf.if %2 {
      %cst_21 = arith.constant 0.000000e+00 : f32
      %29 = vector.broadcast %cst_21 : f32 to vector<8x128xf32>
      %c0_22 = arith.constant 0 : index
      %c0_23 = arith.constant 0 : index
      %30 = vector.load %arg4[%c0_22, %c0_23] : memref<8x128xf32, #tpu.memory_space<vmem>>, vector<8x128xf32>
      tpu.vector_store %arg4[%c0_22, %c0_23], %29 {strides = array<i32>} : memref<8x128xf32, #tpu.memory_space<vmem>>, vector<8x128xf32>,
      %cst_24 = arith.constant 0.000000e+00 : f32
      %31 = vector.broadcast %cst_24 : f32 to vector<8x128xf32>
      %c0_25 = arith.constant 0 : index
      %c0_26 = arith.constant 0 : index
      %32 = vector.load %arg5[%c0_25, %c0_26] : memref<8x128xf32, #tpu.memory_space<vmem>>, vector<8x128xf32>
      tpu.vector_store %arg5[%c0_25, %c0_26], %31 {strides = array<i32>} : memref<8x128xf32, #tpu.memory_space<vmem>>, vector<8x128xf32>,
      %cst_27 = arith.constant 0.000000e+00 : f32
      %33 = vector.broadcast %cst_27 : f32 to vector<8x128xf32>
      %c0_28 = arith.constant 0 : index
      %c0_29 = arith.constant 0 : index
      %34 = vector.load %arg6[%c0_28, %c0_29] : memref<8x128xf32, #tpu.memory_space<vmem>>, vector<8x128xf32>
      tpu.vector_store %arg6[%c0_28, %c0_29], %33 {strides = array<i32>} : memref<8x128xf32, #tpu.memory_space<vmem>>, vector<8x128xf32>,
    } else {
    }
    %c0 = arith.constant 0 : index
    %c0_1 = arith.constant 0 : index
    %3 = vector.load %arg1[%c0, %c0_1] : memref<16x128xf32, #tpu.memory_space<vmem>>, vector<16x128xf32>
    %4 = arith.negf %3 : vector<16x128xf32>
    %5 = math.exp %4 : vector<16x128xf32>
    %cst = arith.constant 1.000000e+00 : f32
    %6 = vector.broadcast %cst : f32 to vector<16x128xf32>
    %7 = arith.addf %6, %5 : vector<16x128xf32>
    %8 = arith.divf %6, %7 : vector<16x128xf32>
    %c0_2 = arith.constant 0 : index
    %c0_3 = arith.constant 0 : index
    %9 = vector.load %arg2[%c0_2, %c0_3] : memref<16x128xf32, #tpu.memory_space<vmem>>, vector<16x128xf32>
    %10 = arith.mulf %8, %9 : vector<16x128xf32>
    %c0_4 = arith.constant 0 : index
    %c0_5 = arith.constant 0 : index
    %11 = vector.load %arg4[%c0_4, %c0_5] : memref<8x128xf32, #tpu.memory_space<vmem>>, vector<8x128xf32>
    %12 = vector.shape_cast %10 : vector<16x128xf32> to vector<2x8x128xf32>
    %cst_6 = arith.constant dense<0.000000e+00> : vector<8x128xf32>
    %13 = vector.multi_reduction <add>, %12, %cst_6 [0] : vector<2x8x128xf32> to vector<8x128xf32>
    %14 = arith.addf %11, %13 : vector<8x128xf32>
    %c0_7 = arith.constant 0 : index
    %c0_8 = arith.constant 0 : index
    %15 = vector.load %arg4[%c0_7, %c0_8] : memref<8x128xf32, #tpu.memory_space<vmem>>, vector<8x128xf32>
    tpu.vector_store %arg4[%c0_7, %c0_8], %14 {strides = array<i32>} : memref<8x128xf32, #tpu.memory_space<vmem>>, vector<8x128xf32>,
    %c0_9 = arith.constant 0 : index
    %c0_10 = arith.constant 0 : index
    %16 = vector.load %arg5[%c0_9, %c0_10] : memref<8x128xf32, #tpu.memory_space<vmem>>, vector<8x128xf32>
    %17 = vector.shape_cast %8 : vector<16x128xf32> to vector<2x8x128xf32>
    %cst_11 = arith.constant dense<0.000000e+00> : vector<8x128xf32>
    %18 = vector.multi_reduction <add>, %17, %cst_11 [0] : vector<2x8x128xf32> to vector<8x128xf32>
    %19 = arith.addf %16, %18 : vector<8x128xf32>
    %c0_12 = arith.constant 0 : index
    %c0_13 = arith.constant 0 : index
    %20 = vector.load %arg5[%c0_12, %c0_13] : memref<8x128xf32, #tpu.memory_space<vmem>>, vector<8x128xf32>
    tpu.vector_store %arg5[%c0_12, %c0_13], %19 {strides = array<i32>} : memref<8x128xf32, #tpu.memory_space<vmem>>, vector<8x128xf32>,
    %c0_14 = arith.constant 0 : index
    %c0_15 = arith.constant 0 : index
    %21 = vector.load %arg6[%c0_14, %c0_15] : memref<8x128xf32, #tpu.memory_space<vmem>>, vector<8x128xf32>
    %22 = vector.shape_cast %9 : vector<16x128xf32> to vector<2x8x128xf32>
    %cst_16 = arith.constant dense<0.000000e+00> : vector<8x128xf32>
    %23 = vector.multi_reduction <add>, %22, %cst_16 [0] : vector<2x8x128xf32> to vector<8x128xf32>
    %24 = arith.addf %21, %23 : vector<8x128xf32>
    %c0_17 = arith.constant 0 : index
    %c0_18 = arith.constant 0 : index
    %25 = vector.load %arg6[%c0_17, %c0_18] : memref<8x128xf32, #tpu.memory_space<vmem>>, vector<8x128xf32>
    tpu.vector_store %arg6[%c0_17, %c0_18], %24 {strides = array<i32>} : memref<8x128xf32, #tpu.memory_space<vmem>>, vector<8x128xf32>,
    %c0_i32_19 = arith.constant 0 : i32
    %26 = arith.cmpi eq, %arg0, %c0_i32_19 : i32
    %27 = arith.extui %26 : i1 to i32
    %c0_i32_20 = arith.constant 0 : i32
    %28 = arith.cmpi ne, %27, %c0_i32_20 : i32
    scf.if %28 {
      %c0_21 = arith.constant 0 : index
      %c0_22 = arith.constant 0 : index
      %29 = vector.load %arg4[%c0_21, %c0_22] : memref<8x128xf32, #tpu.memory_space<vmem>>, vector<8x128xf32>
      %30 = vector.shape_cast %29 : vector<8x128xf32> to vector<1x8x128xf32>
      %cst_23 = arith.constant dense<0.000000e+00> : vector<1xf32>
      %31 = vector.multi_reduction <add>, %30, %cst_23 [1, 2] : vector<1x8x128xf32> to vector<1xf32>
      %32 = vector.shape_cast %31 : vector<1xf32> to vector<1x1x1xf32>
      %33 = vector.extract %32[0, 0, 0] : f32 from vector<1x1x1xf32>
      %c0_24 = arith.constant 0 : index
      %c0_25 = arith.constant 0 : index
      %34 = memref.load %arg3[%c0_24, %c0_25] : memref<1x3xf32, #tpu.memory_space<smem>>
      memref.store %33, %arg3[%c0_24, %c0_25] : memref<1x3xf32, #tpu.memory_space<smem>>
      %c0_26 = arith.constant 0 : index
      %c0_27 = arith.constant 0 : index
      %35 = vector.load %arg5[%c0_26, %c0_27] : memref<8x128xf32, #tpu.memory_space<vmem>>, vector<8x128xf32>
      %36 = vector.shape_cast %35 : vector<8x128xf32> to vector<1x8x128xf32>
      %cst_28 = arith.constant dense<0.000000e+00> : vector<1xf32>
      %37 = vector.multi_reduction <add>, %36, %cst_28 [1, 2] : vector<1x8x128xf32> to vector<1xf32>
      %38 = vector.shape_cast %37 : vector<1xf32> to vector<1x1x1xf32>
      %39 = vector.extract %38[0, 0, 0] : f32 from vector<1x1x1xf32>
      %c0_29 = arith.constant 0 : index
      %c1 = arith.constant 1 : index
      %40 = memref.load %arg3[%c0_29, %c1] : memref<1x3xf32, #tpu.memory_space<smem>>
      memref.store %39, %arg3[%c0_29, %c1] : memref<1x3xf32, #tpu.memory_space<smem>>
      %c0_30 = arith.constant 0 : index
      %c0_31 = arith.constant 0 : index
      %41 = vector.load %arg6[%c0_30, %c0_31] : memref<8x128xf32, #tpu.memory_space<vmem>>, vector<8x128xf32>
      %42 = vector.shape_cast %41 : vector<8x128xf32> to vector<1x8x128xf32>
      %cst_32 = arith.constant dense<0.000000e+00> : vector<1xf32>
      %43 = vector.multi_reduction <add>, %42, %cst_32 [1, 2] : vector<1x8x128xf32> to vector<1xf32>
      %44 = vector.shape_cast %43 : vector<1xf32> to vector<1x1x1xf32>
      %45 = vector.extract %44[0, 0, 0] : f32 from vector<1x1x1xf32>
      %c0_33 = arith.constant 0 : index
      %c2 = arith.constant 2 : index
      %46 = memref.load %arg3[%c0_33, %c2] : memref<1x3xf32, #tpu.memory_space<smem>>
      memref.store %45, %arg3[%c0_33, %c2] : memref<1x3xf32, #tpu.memory_space<smem>>
    } else {
    }
    return
  }
  func.func @transform_0(%arg0: i32) -> (i32, i32) {
    %c0_i32 = arith.constant 0 : i32
    %c0_i32_0 = arith.constant 0 : i32
    return %arg0, %c0_i32 : i32, i32
  }
  func.func @transform_1(%arg0: i32) -> (i32, i32) {
    %c0_i32 = arith.constant 0 : i32
    %c0_i32_0 = arith.constant 0 : i32
    return %arg0, %c0_i32 : i32, i32
  }
  func.func @transform_2(%arg0: i32) -> (i32, i32) {
    %c0_i32 = arith.constant 0 : i32
    %c0_i32_0 = arith.constant 0 : i32
    %c0_i32_1 = arith.constant 0 : i32
    return %c0_i32, %c0_i32_0 : i32, i32
  }
}

</mosaic_0001>

<bundles_post_ra>
// kernel: tpu_custom_call.1
= control target key start
LH: loop header
LB: loop body
LE: loop exit
PB: predicated region body
PF: predicated region fallthrough
CT: control target
= control target key end

     0   :  { %7 = vsyncpa [#allocation6], 0  ;;  %s268_s0 = inlined_call_operand.hbm [shape: f32[16,128], index: 0, kind: input, shape index: {}]   ;;  %s269_s1 = inlined_call_operand.hbm [shape: f32[16,128], index: 1, kind: input, shape index: {}]   ;;  %s270_s2 = inlined_call_operand.hbm [shape: f32[1,3], index: 2, kind: output, shape index: {}]  }
   0x1   :  { %8 = vsyncpa [#allocation9], 0 }
   0x2   :  { %9 = vsyncpa [#allocation7], 0  ;;  %s212_s9 = smov [#allocation5]   ;;  %s152_s13 = scalar_lea.hbm %s268_s0, 256 }
   0x3   :  { %s15_s10 = sshll.u32 %s212_s9, 4  ;;  %p153_p0 = scmp.ne.s32.totalorder %s268_s0, %s152_s13  ;;  %s16_s10 = int_to_ptr.vmem [resolvable:$true] %s15_s10 }
   0x4   :  { %p156_p1 = scmp.lt.u32.totalorder %s152_s13, %s268_s0 }
   0x6   :  { %p158_p2 = pnand %p156_p1, %p153_p0 }
   0x8   :  { %161 = shalt.err (!%p158_p2)
}
   0x9   :  { %s162_s18 = scalar_lea.vmem %s16_s10, 256  ;;  %p167_p4 = scmp.lt.s32.totalorder %s16_s10, %s16_s10 }
   0xa   :  { %p163_p3 = scmp.ne.s32.totalorder %s16_s10, %s162_s18  ;;  %p168_p5 = scmp.lt.s32.totalorder %s162_s18, %s162_s18 }
   0xc   :  { %p169_p6 = por %p168_p5, %p167_p4 }
   0xe   :  { %p170_p7 = pnand %p169_p6, %p163_p3 }
  0x10   :  { %173 = shalt.err (!%p170_p7)
}
  0x11   :  { %s213_s19 = smov 128   ;;  %s214_s20 = smov 8  }
  0x12   :  { %21 = dma.hbm_to_vmem [thread:$0]  %s268_s0, 256, %s16_s10, [#allocation6], %s213_s19, %s213_s19, %s214_s20  }
  0x13   :  { %s215_s23 = smov [#allocation8]   ;;  %s174_s27 = scalar_lea.hbm %s269_s1, 256 }
  0x14   :  { %s27_s24 = sshll.u32 %s215_s23, 4  ;;  %p175_p8 = scmp.ne.s32.totalorder %s269_s1, %s174_s27  ;;  %s28_s24 = int_to_ptr.vmem [resolvable:$true] %s27_s24 }
  0x15   :  { %p178_p9 = scmp.lt.u32.totalorder %s174_s27, %s269_s1 }
  0x17   :  { %p180_p10 = pnand %p178_p9, %p175_p8 }
  0x19   :  { %183 = shalt.err (!%p180_p10)
}
  0x1a   :  { %s184_s4 = scalar_lea.vmem %s28_s24, 256  ;;  %p189_p12 = scmp.lt.s32.totalorder %s28_s24, %s28_s24 }
  0x1b   :  { %p185_p11 = scmp.ne.s32.totalorder %s28_s24, %s184_s4  ;;  %p190_p13 = scmp.lt.s32.totalorder %s184_s4, %s184_s4 }
  0x1d   :  { %p191_p0 = por %p190_p13, %p189_p12 }
  0x1f   :  { %p192_p1 = pnand %p191_p0, %p185_p11 }
  0x21   :  { %195 = shalt.err (!%p192_p1)
}
  0x22   :  { %33 = dma.hbm_to_vmem [thread:$0]  %s269_s1, 256, %s28_s24, [#allocation9], %s213_s19, %s213_s19, %s214_s20  }
  0x23   :  { %206 = dma.done.wait [#allocation6], 256  }
  0x24   :  { %207 = vsyncadd [#allocation6], 4294967040 }
  0x25   :  { %208 = dma.done.wait [#allocation9], 256  }
  0x26   :  { %209 = vsyncadd [#allocation9], 4294967040  ;;  %v61_v0 = vld [vmem:[#allocation8] sm:$0xff]  ;;  %v62_v1 = vld [vmem:[#allocation8 + $0x8] sm:$0xff]  ;;  %s196_s10 = scalar_lea.hbm %s270_s2, 16 }
  0x27   :  { %v47_v2 = vld [vmem:[#allocation5] sm:$0xff]  ;;  %v74_v3 = vadd.f32 %v62_v1, %v61_v0  ;;  %v48_v4 = vld [vmem:[#allocation5 + $0x8] sm:$0xff]  ;;  %p197_p2 = scmp.ne.s32.totalorder %s270_s2, %s196_s10  ;;  %p200_p3 = scmp.lt.u32.totalorder %s196_s10, %s270_s2 }
  0x28   :  { %v131_v5 = vmul.f32 -1.442695, %v47_v2  ;;  %v132_v6 = vmul.f32 -1.442695, %v48_v4 }
  0x29   :  { %105 = vadd.xlane.f32.xlu1 %v74_v3  ;;  %p202_p4 = pnand %p200_p3, %p197_p2 }
  0x2a   :  { %144 = vpow2.f32 %v131_v5 }
  0x2b   :  { %146 = vpow2.f32 %v132_v6 }
  0x34   :  { %v145_v7 = vpop.eup %144 }
  0x35   :  { %v147_v8 = vpop.eup %146  ;;  %v55_v9 = vadd.f32 1.0, %v145_v7 }
  0x36   :  { %v56_v10 = vadd.f32 1.0, %v147_v8 }
  0x37   :  { %148 = vrcp.f32 %v55_v9 }
  0x38   :  { %150 = vrcp.f32 %v56_v10 }
  0x41   :  { %v149_v11 = vpop.eup %148 }
  0x42   :  { %v151_v12 = vpop.eup %150  ;;  %v63_v13 = vmul.f32 %v149_v11, %v61_v0 }
  0x43   :  { %v64_v14 = vmul.f32 %v151_v12, %v62_v1  ;;  %v70_v16 = vadd.f32 %v151_v12, %v149_v11 }
  0x45   :  { %v66_v15 = vadd.f32 %v64_v14, %v63_v13 }
  0x47   :  { %81 = vadd.xlane.f32.xlu0 %v66_v15 }
  0x4b   :  { %93 = vadd.xlane.f32.xlu0 %v70_v16 }
  0xb6   :  { %v106_v17 = vpop.xlane.xlu1 %105 }
  0xb7   :  { %v107_v18 = vrot.slane %v106_v17, 4 }
  0xb9   :  { %v108_v19 = vadd.f32 %v107_v18, %v106_v17 }
  0xbb   :  { %v109_v23 = vrot.slane %v108_v19, 2 }
  0xbd   :  { %v110_v29 = vadd.f32 %v109_v23, %v108_v19 }
  0xbf   :  { %v111_v34 = vrot.slane %v110_v29, 1 }
  0xc1   :  { %v112_v37 = vadd.f32 %v111_v34, %v110_v29 }
  0xd4   :  { %v82_v20 = vpop.xlane.xlu0 %81 }
  0xd5   :  { %v83_v21 = vrot.slane %v82_v20, 4 }
  0xd7   :  { %v84_v22 = vadd.f32 %v83_v21, %v82_v20 }
  0xd8   :  { %v94_v24 = vpop.xlane.xlu0 %93 }
  0xd9   :  { %v85_v25 = vrot.slane %v84_v22, 2  ;;  %v95_v26 = vrot.slane %v94_v24, 4 }
  0xdb   :  { %v96_v27 = vadd.f32 %v95_v26, %v94_v24  ;;  %v86_v28 = vadd.f32 %v85_v25, %v84_v22 }
  0xdd   :  { %v97_v30 = vrot.slane %v96_v27, 2  ;;  %v87_v31 = vrot.slane %v86_v28, 1 }
  0xdf   :  { %v98_v32 = vadd.f32 %v97_v30, %v96_v27  ;;  %v88_v33 = vadd.f32 %v87_v31, %v86_v28 }
  0xe1   :  { %133 = vpush %v88_v33  ;;  %v99_v35 = vrot.slane %v98_v32, 1 }
  0xe3   :  { %v100_v36 = vadd.f32 %v99_v35, %v98_v32 }
  0xe5   :  { %135 = vpush %v100_v36 }
  0xe6   :  { %137 = vpush %v112_v37 }
 0x112   :  { %s134_s1 = spop %133 }
 0x113   :  { %91 = sst [smem:[#allocation10]] %s134_s1 }
 0x116   :  { %s136_s6 = spop %135 }
 0x117   :  { %103 = sst [smem:[#allocation10 + $0x1]] %s136_s6  ;;  %s138_s7 = spop %137 }
 0x118   :  { %115 = sst [smem:[#allocation10 + $0x2]] %s138_s7 }
 0x119   :  { %205 = shalt.err (!%p202_p4)
}
 0x11a   :  { %s216_s15 = smov [#allocation10]  }
 0x11b   :  { %123 = dma.smem_to_hbm %s216_s15, 16, %s270_s2, [#allocation7]  }
 0x11c   :  { %210 = dma.done.wait [#allocation7], 16  }
 0x11d   :  { %211 = vsyncadd [#allocation7], 4294967280 }
 0x11e   :  { %127 = sfence }
 0x11f   :  { %128 = vsyncpa [#allocation6], 1 }
 0x120   :  { %129 = vsyncpa [#allocation9], 1 }
 0x121   :  { %130 = vsyncpa [#allocation7], 1 }

</bundles_post_ra>
